<compile_context>
chip_gen: v5e
topology: v5e:2x2
jax: 0.10.0
libtpu: 0.0.40
codegen_flags: <defaults>
</compile_context>

<pallas_src>
import jax
import jax.numpy as jnp
from jax.experimental import pallas as pl
from jax.experimental.pallas import tpu as pltpu

# ---- small, module-consistent shapes --------------------------------------
B, N, C_IN = 2, 16, 4          # batch, points per cloud, extra point features
DIN = 3 + C_IN                 # xyz ++ points = 7
DIN_PAD = 8                    # pad skinny contraction dim to a full sublane group
HID, FEAT, NCLS = 32, 32, 8    # MLP hidden, pooled feature dim, num classes
NHEAD = 2 * NCLS               # fused classifier + clip-adapter head width

TN = N                         # points per N-tile; TN=N => single step per batch here.
NT = N // TN                   # raise TN to >=512 (mult. of 256 on v6e/v7x) at real N.

# packed parameter layouts
#   wmat (bf16): rows 0:HID   -> W1^T (HID, DIN_PAD)   [cols DIN..DIN_PAD zero]
#                rows HID:..  -> W2^T (FEAT, HID)
#   waux (f32):  rows 0:FEAT, cols 0:NHEAD      -> fused head [Wc | Wa]  (FEAT, NHEAD)
#                rows 0:HID,  col  NHEAD        -> b1 column
#                rows 0:FEAT, col  NHEAD+1      -> b2 column
#                row  BH_ROW, cols 0:NHEAD      -> head bias row
WMAT_ROWS = HID + FEAT             # 64
WMAT_COLS = max(DIN_PAD, HID)      # 32
BH_ROW = max(HID, FEAT)            # 32
AUXROWS = BH_ROW + 1               # 33
AUXCOLS = NHEAD + 2                # 18

OUT_W = 128                        # lane-dense packed output row


def suem_kernel(labels_ref, x_ref, wmat_ref, waux_ref, out_ref, acc_ref):
    """One (batch b, N-tile nt) step of the fused SUEM forward.

    labels_ref : SMEM (B,) int32                (scalar prefetch)
    x_ref      : VMEM (DIN_PAD, TN) bf16        lane-dense point tile
    wmat_ref   : VMEM (WMAT_ROWS, WMAT_COLS) bf16  packed matmul weights (resident)
    waux_ref   : VMEM (AUXROWS, AUXCOLS) f32       biases + fused heads (resident)
    out_ref    : VMEM (8, OUT_W) f32            packed [pred | adapter | perloss | 0..]
    acc_ref    : VMEM (FEAT, TN) f32            tile-shaped running max-pool accumulator
    """
    b = pl.program_id(0)
    nt = pl.program_id(1)

    # --- init running max-pool accumulator on the first N tile of each batch ---
    @pl.when(nt == 0)
    def _init():
        acc_ref[...] = jnp.full((FEAT, TN), -jnp.inf, jnp.float32)

    # --- unpack resident parameters (static slices of loaded tiles, zero-cost views) ---
    wm = wmat_ref[...]                                  # (64, 32) bf16, pre-cast on host
    w1t = wm[0:HID, 0:DIN_PAD]                          # (HID, DIN_PAD) bf16
    w2t = wm[HID:HID + FEAT, 0:HID]                     # (FEAT, HID)    bf16
    waux = waux_ref[...]                                # (33, 18) f32
    b1 = waux[0:HID, NHEAD:NHEAD + 1]                   # (HID, 1)  f32 column
    b2 = waux[0:FEAT, NHEAD + 1:NHEAD + 2]              # (FEAT, 1) f32 column

    # --- per-point MLP, point axis on lanes: (HID|FEAT, TN) tiles, f32 accumulation ---
    xT = x_ref[...]                                                   # (DIN_PAD, TN) bf16
    h = jnp.dot(w1t, xT, preferred_element_type=jnp.float32) + b1     # (HID, TN) f32
    h = jnp.maximum(h, 0.0)                                           # ReLU (f32 VPU; v5e-safe)
    f = jnp.dot(w2t, h.astype(jnp.bfloat16),
                preferred_element_type=jnp.float32) + b2              # (FEAT, TN) f32

    # --- symmetric max pool: pure elementwise VALU max per step (no per-step XLU) ---
    acc_ref[...] = jnp.maximum(acc_ref[...], f)

    # --- finalize on the last N tile: fused heads + per-example cross entropy ---
    @pl.when(nt == pl.num_programs(1) - 1)
    def _finalize():
        wh = waux[0:FEAT, 0:NHEAD]                        # (FEAT, NHEAD) f32
        bh = waux[BH_ROW:BH_ROW + 1, 0:NHEAD]             # (1, NHEAD)    f32

        # single XLU lane-reduce for the whole batch element
        feat_col = jnp.max(acc_ref[...], axis=1, keepdims=True)       # (FEAT, 1)

        # logits[0, j] = sum_i feat[i] * wh[i, j] + bh[j]   (no transpose needed)
        logits = jnp.sum(feat_col * wh, axis=0, keepdims=True) + bh   # (1, NHEAD)
        pred = logits[:, 0:NCLS]                                      # classifier head
        adapt = logits[:, NCLS:NHEAD]                                 # clip-adapter head

        # one-hot built in-kernel from the prefetched label scalar (no one-hot DMA)
        lbl = labels_ref[b]
        cls_iota = jax.lax.broadcasted_iota(jnp.int32, (1, NCLS), 1)
        onehot = (cls_iota == lbl).astype(jnp.float32)

        def ce(lg):  # per-example cross entropy, f32 (EUP exp/log)
            m = jnp.max(lg, axis=-1, keepdims=True)
            lse = m + jnp.log(jnp.sum(jnp.exp(lg - m), axis=-1, keepdims=True))
            picked = jnp.sum(onehot * lg, axis=-1, keepdims=True)
            return lse - picked

        perloss = ce(pred) + ce(adapt)                                # (1, 1)

        pad = jnp.zeros((1, OUT_W - NHEAD - 1), jnp.float32)
        row = jnp.concatenate([pred, adapt, perloss, pad], axis=-1)   # (1, 128)
        out_ref[...] = jnp.broadcast_to(row, (8, OUT_W))              # full unmasked store


def suem_forward(xyz, points, labels, wmat, waux):
    """Returns (pred, loss) exactly like SUEM_model.forward."""
    # Build the lane-dense (B, DIN_PAD, N) bf16 point tensor (half-width staged copy).
    # TODO(synk): at real scale produce x directly in channel-major (B, C, N) layout
    # upstream so this staged transpose copy disappears entirely.
    x = jnp.concatenate(
        [xyz, points, jnp.zeros((B, N, DIN_PAD - DIN), xyz.dtype)], axis=-1)
    xT = jnp.transpose(x, (0, 2, 1)).astype(jnp.bfloat16)             # (B, DIN_PAD, N)

    out = pl.pallas_call(
        suem_kernel,
        out_shape=jax.ShapeDtypeStruct((B, 8, OUT_W), jnp.float32),
        grid_spec=pltpu.PrefetchScalarGridSpec(
            num_scalar_prefetch=1,                 # labels -> SMEM
            grid=(B, NT),
            in_specs=[
                # x: one (batch, N-tile) lane-dense block per step
                pl.BlockSpec((None, DIN_PAD, TN), lambda b, nt, lbl: (b, 0, nt)),
                # packed bf16 matmul weights: constant index -> resident, single DMA
                # (pipeline_mode=pl.Buffered(1) would free its 2nd buffer once params grow)
                pl.BlockSpec((WMAT_ROWS, WMAT_COLS), lambda b, nt, lbl: (0, 0)),
                # packed f32 biases + fused heads: resident as well
                pl.BlockSpec((AUXROWS, AUXCOLS), lambda b, nt, lbl: (0, 0)),
            ],
            # lane-dense output row per batch, written once on the last N tile
            out_specs=pl.BlockSpec((None, 8, OUT_W), lambda b, nt, lbl: (b, 0, 0)),
            scratch_shapes=[pltpu.VMEM((FEAT, TN), jnp.float32)],     # max-pool accumulator
        ),
        compiler_params=pltpu.CompilerParams(
            dimension_semantics=("parallel", "arbitrary")),
    )(labels.astype(jnp.int32), xT, wmat, waux)

    packed = out[:, 0, :]                    # (B, 128)
    pred = packed[:, :NCLS]                  # (B, NCLS)
    per_ex = packed[:, NHEAD]                # CE(pred) + CE(adapter), per example
    loss = jnp.mean(per_ex)                  # = loss_func(pred, labels) + loss_cur
    return pred, loss


def init_packed_params(key):
    """Synthetic model + clip-adapter parameters, pre-transposed and pre-cast on host."""
    ks = jax.random.split(key, 4)
    w1 = 0.1 * jax.random.normal(ks[0], (DIN, HID), jnp.float32)
    w2 = 0.1 * jax.random.normal(ks[1], (HID, FEAT), jnp.float32)
    wc = 0.1 * jax.random.normal(ks[2], (FEAT, NCLS), jnp.float32)   # classifier head
    wa = 0.1 * jax.random.normal(ks[3], (FEAT, NCLS), jnp.float32)   # clip-adapter head
    b1 = jnp.zeros((HID,), jnp.float32)
    b2 = jnp.zeros((FEAT,), jnp.float32)
    bhead = jnp.zeros((NHEAD,), jnp.float32)

    wmat = jnp.zeros((WMAT_ROWS, WMAT_COLS), jnp.float32)
    wmat = wmat.at[0:HID, 0:DIN].set(w1.T)                    # W1^T (padded cols DIN..8)
    wmat = wmat.at[HID:HID + FEAT, 0:HID].set(w2.T)           # W2^T
    wmat = wmat.astype(jnp.bfloat16)                          # pre-cast once, not per step

    waux = jnp.zeros((AUXROWS, AUXCOLS), jnp.float32)
    waux = waux.at[0:FEAT, 0:NHEAD].set(jnp.concatenate([wc, wa], axis=-1))  # fused heads
    waux = waux.at[0:HID, NHEAD].set(b1)                      # b1 column
    waux = waux.at[0:FEAT, NHEAD + 1].set(b2)                 # b2 column
    waux = waux.at[BH_ROW, 0:NHEAD].set(bhead)                # head bias row
    return wmat, waux


if __name__ == "__main__":
    key = jax.random.PRNGKey(0)
    k_xyz, k_pts, k_lbl, k_par = jax.random.split(key, 4)

    xyz = jax.random.normal(k_xyz, (B, N, 3), jnp.float32)
    points = jax.random.normal(k_pts, (B, N, C_IN), jnp.float32)
    labels = jax.random.randint(k_lbl, (B,), 0, NCLS)
    wmat, waux = init_packed_params(k_par)

    # TODO(synk): the real SUEM inner `model` / `clip_adapter_model` architectures are
    # injected at construction time and not specified; a synthetic PointNet-style
    # stand-in with identical wrapper semantics (pred, loss = CE(pred) + loss_cur) is used.
    fwd = jax.jit(lambda a, p, l: suem_forward(a, p, l, wmat, waux))
    pred, loss = fwd(xyz, points, labels)
    jax.block_until_ready((pred, loss))

    assert pred.shape == (B, NCLS) and loss.shape == ()
    assert bool(jnp.isfinite(loss))
    print("KERNEL_OK")
</pallas_src>

<mosaic_0001>
module attributes {stable_mosaic.version = 11 : i64} {
  func.func @suem_kernel(%arg0: i32, %arg1: i32, %arg2: memref<2xi32, #tpu.memory_space<smem>>, %arg3: memref<1x8x16xbf16, #tpu.memory_space<vmem>>, %arg4: memref<64x32xbf16, #tpu.memory_space<vmem>>, %arg5: memref<33x18xf32, #tpu.memory_space<vmem>>, %arg6: memref<1x8x128xf32, #tpu.memory_space<vmem>>, %arg7: memref<32x16xf32, #tpu.memory_space<vmem>>) attributes {dimension_semantics = [#tpu.dimension_semantics<parallel>, #tpu.dimension_semantics<arbitrary>], iteration_bounds = array<i64: 2, 1>, scalar_prefetch = 1 : i64, scratch_operands = 1 : i64, tpu.core_type = #tpu.core_type<tc>, window_params = [{transform_indices = @transform_0, window_bounds = array<i64: 1, 8, 16>}, {pipeline_mode = #tpu.pipeline_mode<synchronous>, transform_indices = @transform_1, window_bounds = array<i64: 64, 32>}, {pipeline_mode = #tpu.pipeline_mode<synchronous>, transform_indices = @transform_2, window_bounds = array<i64: 33, 18>}, {transform_indices = @transform_3, window_bounds = array<i64: 1, 8, 128>}]} {
    %c0_i32 = arith.constant 0 : i32
    %0 = arith.cmpi eq, %arg1, %c0_i32 : i32
    %1 = arith.extui %0 : i1 to i32
    %c0_i32_0 = arith.constant 0 : i32
    %2 = arith.cmpi ne, %1, %c0_i32_0 : i32
    scf.if %2 {
      %cst_15 = arith.constant 0xFF800000 : f32
      %26 = vector.broadcast %cst_15 : f32 to vector<32x16xf32>
      %c0_16 = arith.constant 0 : index
      %c0_17 = arith.constant 0 : index
      %27 = vector.load %arg7[%c0_16, %c0_17] : memref<32x16xf32, #tpu.memory_space<vmem>>, vector<32x16xf32>
      tpu.vector_store %arg7[%c0_16, %c0_17], %26 {strides = array<i32>} : memref<32x16xf32, #tpu.memory_space<vmem>>, vector<32x16xf32>,
    } else {
    }
    %c0 = arith.constant 0 : index
    %c0_1 = arith.constant 0 : index
    %3 = vector.load %arg4[%c0, %c0_1] : memref<64x32xbf16, #tpu.memory_space<vmem>>, vector<64x32xbf16>
    %4 = vector.extract_strided_slice %3 {offsets = [0, 0], sizes = [32, 8], strides = [1, 1]} : vector<64x32xbf16> to vector<32x8xbf16>
    %5 = vector.extract_strided_slice %3 {offsets = [32, 0], sizes = [32, 32], strides = [1, 1]} : vector<64x32xbf16> to vector<32x32xbf16>
    %c0_2 = arith.constant 0 : index
    %c0_3 = arith.constant 0 : index
    %6 = vector.load %arg5[%c0_2, %c0_3] : memref<33x18xf32, #tpu.memory_space<vmem>>, vector<33x18xf32>
    %7 = vector.extract_strided_slice %6 {offsets = [0, 16], sizes = [32, 1], strides = [1, 1]} : vector<33x18xf32> to vector<32x1xf32>
    %8 = vector.extract_strided_slice %6 {offsets = [0, 17], sizes = [32, 1], strides = [1, 1]} : vector<33x18xf32> to vector<32x1xf32>
    %c0_4 = arith.constant 0 : index
    %c0_5 = arith.constant 0 : index
    %c0_6 = arith.constant 0 : index
    %9 = vector.load %arg3[%c0_4, %c0_5, %c0_6] : memref<1x8x16xbf16, #tpu.memory_space<vmem>>, vector<1x8x16xbf16>
    %10 = vector.shape_cast %9 : vector<1x8x16xbf16> to vector<8x16xbf16>
    %cst = arith.constant dense<0.000000e+00> : vector<32x16xf32>
    %11 = tpu.matmul %4, %10, %cst {dimension_numbers = #tpu.dot_dimension_numbers<[1], [0], [0], [1], [0, 0, 1, 1], [], []>} : vector<32x8xbf16>, vector<8x16xbf16>, vector<32x16xf32> -> vector<32x16xf32>
    %12 = vector.broadcast %7 : vector<32x1xf32> to vector<32x16xf32>
    %13 = arith.addf %11, %12 : vector<32x16xf32>
    %cst_7 = arith.constant 0.000000e+00 : f32
    %14 = vector.broadcast %cst_7 : f32 to vector<32x16xf32>
    %15 = arith.maximumf %13, %14 : vector<32x16xf32>
    %16 = arith.truncf %15 : vector<32x16xf32> to vector<32x16xbf16>
    %cst_8 = arith.constant dense<0.000000e+00> : vector<32x16xf32>
    %17 = tpu.matmul %5, %16, %cst_8 {dimension_numbers = #tpu.dot_dimension_numbers<[1], [0], [0], [1], [0, 0, 1, 1], [], []>} : vector<32x32xbf16>, vector<32x16xbf16>, vector<32x16xf32> -> vector<32x16xf32>
    %18 = vector.broadcast %8 : vector<32x1xf32> to vector<32x16xf32>
    %19 = arith.addf %17, %18 : vector<32x16xf32>
    %c0_9 = arith.constant 0 : index
    %c0_10 = arith.constant 0 : index
    %20 = vector.load %arg7[%c0_9, %c0_10] : memref<32x16xf32, #tpu.memory_space<vmem>>, vector<32x16xf32>
    %21 = arith.maximumf %20, %19 : vector<32x16xf32>
    %c0_11 = arith.constant 0 : index
    %c0_12 = arith.constant 0 : index
    %22 = vector.load %arg7[%c0_11, %c0_12] : memref<32x16xf32, #tpu.memory_space<vmem>>, vector<32x16xf32>
    tpu.vector_store %arg7[%c0_11, %c0_12], %21 {strides = array<i32>} : memref<32x16xf32, #tpu.memory_space<vmem>>, vector<32x16xf32>,
    %c0_i32_13 = arith.constant 0 : i32
    %23 = arith.cmpi eq, %arg1, %c0_i32_13 : i32
    %24 = arith.extui %23 : i1 to i32
    %c0_i32_14 = arith.constant 0 : i32
    %25 = arith.cmpi ne, %24, %c0_i32_14 : i32
    scf.if %25 {
      %26 = vector.extract_strided_slice %6 {offsets = [0, 0], sizes = [32, 16], strides = [1, 1]} : vector<33x18xf32> to vector<32x16xf32>
      %27 = vector.extract_strided_slice %6 {offsets = [32, 0], sizes = [1, 16], strides = [1, 1]} : vector<33x18xf32> to vector<1x16xf32>
      %c0_15 = arith.constant 0 : index
      %c0_16 = arith.constant 0 : index
      %28 = vector.load %arg7[%c0_15, %c0_16] : memref<32x16xf32, #tpu.memory_space<vmem>>, vector<32x16xf32>
      %cst_17 = arith.constant dense<0xFF800000> : vector<32xf32>
      %29 = vector.multi_reduction <maximumf>, %28, %cst_17 [1] : vector<32x16xf32> to vector<32xf32>
      %30 = vector.shape_cast %29 : vector<32xf32> to vector<32x1xf32>
      %31 = vector.broadcast %30 : vector<32x1xf32> to vector<32x16xf32>
      %32 = arith.mulf %31, %26 : vector<32x16xf32>
      %cst_18 = arith.constant dense<0.000000e+00> : vector<16xf32>
      %33 = vector.multi_reduction <add>, %32, %cst_18 [0] : vector<32x16xf32> to vector<16xf32>
      %34 = vector.shape_cast %33 : vector<16xf32> to vector<1x16xf32>
      %35 = arith.addf %34, %27 : vector<1x16xf32>
      %36 = vector.extract_strided_slice %35 {offsets = [0, 0], sizes = [1, 8], strides = [1, 1]} : vector<1x16xf32> to vector<1x8xf32>
      %37 = vector.extract_strided_slice %35 {offsets = [0, 8], sizes = [1, 8], strides = [1, 1]} : vector<1x16xf32> to vector<1x8xf32>
      %38 = arith.index_cast %arg0 : i32 to index
      %39 = memref.load %arg2[%38] : memref<2xi32, #tpu.memory_space<smem>>
      %40 = tpu.iota {dimensions = array<i32: 1>} : vector<1x8xi32>
      %41 = vector.broadcast %39 : i32 to vector<1x8xi32>
      %42 = arith.cmpi eq, %40, %41 : vector<1x8xi32>
      %43 = arith.extui %42 : vector<1x8xi1> to vector<1x8xi32>
      %44 = arith.sitofp %43 : vector<1x8xi32> to vector<1x8xf32>
      %cst_19 = arith.constant dense<0xFF800000> : vector<1xf32>
      %45 = vector.multi_reduction <maximumf>, %36, %cst_19 [1] : vector<1x8xf32> to vector<1xf32>
      %46 = vector.shape_cast %45 : vector<1xf32> to vector<1x1xf32>
      %47 = vector.broadcast %46 : vector<1x1xf32> to vector<1x8xf32>
      %48 = arith.subf %36, %47 : vector<1x8xf32>
      %49 = math.exp %48 : vector<1x8xf32>
      %cst_20 = arith.constant dense<0.000000e+00> : vector<1xf32>
      %50 = vector.multi_reduction <add>, %49, %cst_20 [1] : vector<1x8xf32> to vector<1xf32>
      %51 = vector.shape_cast %50 : vector<1xf32> to vector<1x1xf32>
      %52 = math.log %51 : vector<1x1xf32>
      %53 = arith.addf %46, %52 : vector<1x1xf32>
      %54 = arith.mulf %44, %36 : vector<1x8xf32>
      %cst_21 = arith.constant dense<0.000000e+00> : vector<1xf32>
      %55 = vector.multi_reduction <add>, %54, %cst_21 [1] : vector<1x8xf32> to vector<1xf32>
      %56 = vector.shape_cast %55 : vector<1xf32> to vector<1x1xf32>
      %57 = arith.subf %53, %56 : vector<1x1xf32>
      %cst_22 = arith.constant dense<0xFF800000> : vector<1xf32>
      %58 = vector.multi_reduction <maximumf>, %37, %cst_22 [1] : vector<1x8xf32> to vector<1xf32>
      %59 = vector.shape_cast %58 : vector<1xf32> to vector<1x1xf32>
      %60 = vector.broadcast %59 : vector<1x1xf32> to vector<1x8xf32>
      %61 = arith.subf %37, %60 : vector<1x8xf32>
      %62 = math.exp %61 : vector<1x8xf32>
      %cst_23 = arith.constant dense<0.000000e+00> : vector<1xf32>
      %63 = vector.multi_reduction <add>, %62, %cst_23 [1] : vector<1x8xf32> to vector<1xf32>
      %64 = vector.shape_cast %63 : vector<1xf32> to vector<1x1xf32>
      %65 = math.log %64 : vector<1x1xf32>
      %66 = arith.addf %59, %65 : vector<1x1xf32>
      %67 = arith.mulf %44, %37 : vector<1x8xf32>
      %cst_24 = arith.constant dense<0.000000e+00> : vector<1xf32>
      %68 = vector.multi_reduction <add>, %67, %cst_24 [1] : vector<1x8xf32> to vector<1xf32>
      %69 = vector.shape_cast %68 : vector<1xf32> to vector<1x1xf32>
      %70 = arith.subf %66, %69 : vector<1x1xf32>
      %71 = arith.addf %57, %70 : vector<1x1xf32>
      %cst_25 = arith.constant 0.000000e+00 : f32
      %72 = vector.broadcast %cst_25 : f32 to vector<1x111xf32>
      %73 = tpu.concatenate %36, %37, %71, %72 in 1 : vector<1x8xf32>, vector<1x8xf32>, vector<1x1xf32>, vector<1x111xf32> -> vector<1x128xf32>
      %74 = vector.shape_cast %73 : vector<1x128xf32> to vector<1x128xf32>
      %75 = vector.broadcast %74 : vector<1x128xf32> to vector<8x128xf32>
      %c0_26 = arith.constant 0 : index
      %c0_27 = arith.constant 0 : index
      %c0_28 = arith.constant 0 : index
      %76 = vector.load %arg6[%c0_26, %c0_27, %c0_28] : memref<1x8x128xf32, #tpu.memory_space<vmem>>, vector<1x8x128xf32>
      %77 = vector.shape_cast %76 : vector<1x8x128xf32> to vector<8x128xf32>
      %78 = vector.shape_cast %75 : vector<8x128xf32> to vector<1x8x128xf32>
      tpu.vector_store %arg6[%c0_26, %c0_27, %c0_28], %78 {strides = array<i32>} : memref<1x8x128xf32, #tpu.memory_space<vmem>>, vector<1x8x128xf32>,
    } else {
    }
    return
  }
  func.func @transform_0(%arg0: i32, %arg1: i32, %arg2: memref<2xi32, #tpu.memory_space<smem>>) -> (i32, i32, i32) {
    %c0_i32 = arith.constant 0 : i32
    %c0_i32_0 = arith.constant 0 : i32
    return %arg0, %c0_i32, %arg1 : i32, i32, i32
  }
  func.func @transform_1(%arg0: i32, %arg1: i32, %arg2: memref<2xi32, #tpu.memory_space<smem>>) -> (i32, i32) {
    %c0_i32 = arith.constant 0 : i32
    %c0_i32_0 = arith.constant 0 : i32
    %c0_i32_1 = arith.constant 0 : i32
    return %c0_i32, %c0_i32_0 : i32, i32
  }
  func.func @transform_2(%arg0: i32, %arg1: i32, %arg2: memref<2xi32, #tpu.memory_space<smem>>) -> (i32, i32) {
    %c0_i32 = arith.constant 0 : i32
    %c0_i32_0 = arith.constant 0 : i32
    %c0_i32_1 = arith.constant 0 : i32
    return %c0_i32, %c0_i32_0 : i32, i32
  }
  func.func @transform_3(%arg0: i32, %arg1: i32, %arg2: memref<2xi32, #tpu.memory_space<smem>>) -> (i32, i32, i32) {
    %c0_i32 = arith.constant 0 : i32
    %c0_i32_0 = arith.constant 0 : i32
    %c0_i32_1 = arith.constant 0 : i32
    return %arg0, %c0_i32, %c0_i32_0 : i32, i32, i32
  }
}

</mosaic_0001>

<bundles_post_ra>
// kernel: _lambda_.1
= control target key start
LH: loop header
LB: loop body
LE: loop exit
PB: predicated region body
PF: predicated region fallthrough
CT: control target
= control target key end

     0   :  { %s708_s18 = smov [#allocation4]   ;;  %s845_s0 = inlined_call_operand.vmem [shape: s32[2], index: 0, kind: input, shape index: {}]   ;;  %s846_s1 = inlined_call_operand.vmem [shape: bf16[2,8,16], index: 1, kind: input, shape index: {}]   ;;  %s847_s2 = inlined_call_operand.vmem [shape: bf16[64,32], index: 2, kind: input, shape index: {}]   ;;  %s848_s3 = inlined_call_operand.hbm [shape: f32[33,18], index: 3, kind: input, shape index: {}]   ;;  %s849_s4 = inlined_call_operand.vmem [shape: f32[2,8,128], index: 4, kind: output, shape index: {}]  }
   0x1   :  { %s10_s17 = sshll.u32 %s845_s0, 4  ;;  %s11_s17 = int_to_ptr.vmem [resolvable:$true] %s10_s17 }
   0x2   :  { %13 = dma.vmem_to_smem %s11_s17, 16, %s708_s18, [#allocation3] }
   0x3   :  { %690 = dma.done.wait [#allocation3], 16 }
   0x4   :  { %691 = vsyncadd [#allocation3], 4294967280 }
   0x5   :  { %16 = sfence }
   0x6   :  { %17 = vsyncpa [#allocation6], 0  ;;  %s745_s19 = smov 0   ;;  %s747_s20 = smov 0  }
   0x7   :  { %s749_s21 = smov 0  }
   0x8 LB: > { %s541_s0 = sadd.s32 4294967295, %s706_s21   ;;  %s35_s22 = sadd.s32 1, %s702_s20  ;;  %s706_s21 = sphi %s749_s21, %s23_s21   ;;  %s702_s20 = sphi %s747_s20, %s851_s20   ;;  %s698_s19 = sphi %s745_s19, %s850_s19  }
   0x9   : > { %p37_p0 = scmp.ge.s32.totalorder %s35_s22, 2  ;;  %p543_p1 = scmp.ge.s32.totalorder %s706_s21, 1 }
   0xa   : > { %p136_p2 = scmp.lt.s32.totalorder %s706_s21, 3  ;;  %p588_p4 = scmp.eq.s32.totalorder %s541_s0, 0 }
   0xb   : > { %s853_s22 = smov (%p37_p0, %s35_s22), 0  ;;  %s150_s25 = sshll.u32 %s848_s3, 4  ;;  %s151_s25 = int_to_ptr.hbm [resolvable:$true] %s150_s25 }
   0xc   : > { %p137_p3 = pnand %p543_p1, %p136_p2  ;;  %s709_s26 = smov [#allocation5]  }
   0xd   : > { %s152_s27 = sshll.u32 %s709_s26, 4  ;;  %s710_s28 = smov 128   ;;  %s153_s27 = int_to_ptr.vmem [resolvable:$true] %s152_s27 }
   0xe   : > { %p584_p5 = pneg %p137_p3  ;;  %s711_s29 = smov 8  }
   0xf   : > { %178 = sbr.rel (%p137_p3) target bundleno = 829 (0x33d), region = 32 }
  0x10   : > { %p585_p6 = pnand %p588_p4, %p584_p5 }
  0x12   : > { %587 = dma.hbm_to_vmem [thread:$0]  (!%p585_p6), %s151_s25, 640, %s153_s27, [#allocation6], %s710_s28, %s710_s28, %s711_s29  }
  0x14   : > { %693 = dma.done.wait (%p588_p4), [#allocation6], 640  }
  0x15   : > { %695 = vsyncadd (%p588_p4), [#allocation6], 4294966656  ;;  %p204_p7 = scmp.lt.s32.totalorder %s698_s19, 1  ;;  %v712_v0 = vmov 16   ;;  %vm276_vm0 = vcmask 1043456   ;;  %v574_v2 = vld [vmem:[%s847_s2 + $0x8] sm:$0xff] }
  0x16   : > { %623 = vset.pattern.permute.xlu0 %v712_v0  ;;  %624 = vset.pattern.permute.xlu1 %v712_v0  ;;  %v573_v4 = vld [vmem:[%s847_s2] sm:$0xff]  ;;  %v783_v5 = vld [vmem:[#allocation5 + $0x10] sm:$0xff]  ;;  %vm269_vm1 = vcmask 64512   ;;  %v789_v7 = vld [vmem:[#allocation5 + $0x18] sm:$0xff]  ;;  %v713_v9 = vmov 17   ;;  %vm331_vm2 = vcmask 261120  }
  0x17   : > { %s771_s30 = scalar_select %p204_p7, %s698_s19, 1  ;;  %v785_v6 = vld [vmem:[#allocation5] sm:$0xff]  ;;  %251 = vperm.xlu0 %623, %v783_v5   ;;  %v791_v8 = vld [vmem:[#allocation5 + $0x8] sm:$0xff]  ;;  %625 = vset.pattern.permute.xlu2 %v713_v9  ;;  %v575_v28 = vld [vmem:[%s847_s2 + $0x10] sm:$0xff]  ;;  %vm220_vm3 = vcmask 130048   ;;  %v714_v30 = vmov -inf  }
  0x18   : > { %241 = vperm.xlu1 %624, %v785_v6   ;;  %306 = vperm.xlu2 %625, %v785_v6   ;;  %v576_v29 = vld [vmem:[%s847_s2 + $0x18] sm:$0xff]  ;;  %221 = vst.msk [vmem:[#allocation2] sm:$0xff] %vm220_vm3, %v714_v30  ;;  %vm432_vm4 = vcmask 122944   ;;  %vm414_vm5 = vcmask 57344   ;;  %s715_s17 = smov 120   ;;  %s407_s18 = sld [smem:[#allocation4 + %s698_s19]] }
  0x19   : > { %s548_s5 = sshll.u32 %s771_s30, 2  ;;  %222 = vst.msk [vmem:[#allocation2 + $0x8] sm:$0xff] %vm220_vm3, %v714_v30  ;;  %s549_s19 = sshll.u32 %s771_s30, 3  ;;  %vm460_vm7 = vcmask 138240  }
  0x1a   : > { %s210_s8 = scalar_lea.vmem %s846_s1, %s548_s5  ;;  %223 = vst.msk [vmem:[#allocation2 + $0x10] sm:$0xff] %vm220_vm3, %v714_v30  ;;  %s214_s24 = scalar_lea.vmem %s849_s4, %s549_s19 }
  0x1b   : > { %v238_v1 = vld [vmem:[%s210_s8] sm:$0xf]  ;;  %224 = vst.msk [vmem:[#allocation2 + $0x18] sm:$0xff] %vm220_vm3, %v714_v30 }
  0x1c   : > { %v278_v3 = vsel %vm276_vm0, %v238_v1, 0 }
  0x1d   : > { %577 = vmatpush.bf16.msra.mxu3 %v278_v3  ;;  %287 = vmatpush.bf16.msra.mxu0 %v278_v3 }
  0x1f   : > { %256 = vperm.xlu0 %623, %v789_v7   ;;  %v357_v33 = vld [vmem:[#allocation2] sm:$0xff] }
  0x20   : > { %559 = vmatmul.msk.bf16.vlgmr.msra.gmra.mxu3 %vm269_vm1, %v574_v2  ;;  %558 = vmatmul.msk.bf16.vlgmr.msra.gmra.mxu0 %vm269_vm1, %v573_v4  ;;  %v358_v42 = vld [vmem:[#allocation2 + $0x8] sm:$0xff] }
  0x21   : > { %246 = vperm.xlu1 %624, %v791_v8   ;;  %310 = vperm.xlu2 %625, %v791_v8   ;;  %v359_v38 = vld [vmem:[#allocation2 + $0x10] sm:$0xff] }
  0x22   : > { %v360_v50 = vld [vmem:[#allocation2 + $0x18] sm:$0xff] }
  0x27   : > { %626 = vset.pattern.permute.xlu0 %v713_v9 }
  0x28   : > { %314 = vperm.xlu0 %626, %v783_v5  }
  0x29   : > { %627 = vset.pattern.permute.xlu1 %v713_v9 }
  0x2a   : > { %318 = vperm.xlu1 %627, %v789_v7  }
  0x72   : > { %v307_v31 = vpop.permute.xlu2 %306 }
  0x7b   : > { %v311_v40 = vpop.permute.xlu2 %310 }
  0x89   : > { %v252_v12 = vpop.permute.xlu0 %251 }
  0x8a   : > { %v242_v10 = vpop.permute.xlu1 %241 }
  0x91   : > { %v257_v17 = vpop.permute.xlu0 %256 }
  0x93   : > { %v247_v14 = vpop.permute.xlu1 %246 }
  0x9a   : > { %v315_v36 = vpop.permute.xlu0 %314 }
  0x9c   : > { %v319_v46 = vpop.permute.xlu1 %318 }
  0x9d   : > { %v289_v11 = vpop.f32.mrf.mxu0 }
  0x9e   : > { %v290_v19 = vadd.f32 %v289_v11, %v242_v10 }
  0xa0   : > { %v299_v24 = vmax.f32 %v290_v19, 0.0 }
  0xa3   : > { %v294_v13 = vpop.f32.mrf.mxu3 }
  0xa4   : > { %v295_v16 = vadd.f32 %v294_v13, %v252_v12 }
  0xa5   : > { %v291_v15 = vpop.f32.mrf.mxu0 }
  0xa6   : > { %v292_v20 = vadd.f32 %v291_v15, %v247_v14  ;;  %v301_v22 = vmax.f32 %v295_v16, 0.0 }
  0xa8   : > { %v300_v25 = vmax.f32 %v292_v20, 0.0  ;;  %v408_v20 = vlaneseq }
  0xaa   : > { %v303_v27 = vpack.c.bf16 %v300_v25, %v299_v24 }
  0xab   : > { %v296_v18 = vpop.f32.mrf.mxu3 }
  0xac   : > { %v297_v21 = vadd.f32 %v296_v18, %v257_v17  ;;  %v237_v17 = vld [vmem:[#allocation5 + $0x20] sm:$0x1] }
  0xae   : > { %v302_v23 = vmax.f32 %v297_v21, 0.0  ;;  %v409_v21 = vand.u32 127, %v408_v20 }
  0xb0   : > { %v304_v26 = vpack.c.bf16 %v302_v23, %v301_v22  ;;  %v410_v22 = vstv %s407_s18  ;;  %v716_v23 = vmov 0.0  }
  0xb1   : > { %vm411_vm6 = vcmp.eq.s32.totalorder %v409_v21, %v410_v22 }
  0xb2   : > { %344 = vmatpush.bf16.msra.mxu1 %v304_v26  ;;  %578 = vmatpush.bf16.msra.mxu2 %v304_v26  ;;  %v570_v24 = vsel %vm411_vm6, 1.0, %v716_v23 }
  0xb6   : > { %345 = vmatpush.bf16.msra.mxu1 %v303_v27  ;;  %579 = vmatpush.bf16.msra.mxu2 %v303_v27 }
  0xb9   : > { %568 = vmatmul.msk.bf16.vlgmr.msra.gmra.mxu1 %vm331_vm2, %v575_v28  ;;  %569 = vmatmul.msk.bf16.vlgmr.msra.gmra.mxu2 %vm331_vm2, %v576_v29 }
 0x136   : > { %v347_v32 = vpop.f32.mrf.mxu1 }
 0x137   : > { %v348_v34 = vadd.f32 %v347_v32, %v307_v31 }
 0x139   : > { %v361_v35 = vmax.f32 %v357_v33, %v348_v34 }
 0x13b   : > { %366 = vst.msk [vmem:[#allocation2] sm:$0xff] %vm220_vm3, %v361_v35 }
 0x13c   : > { %v352_v37 = vpop.f32.mrf.mxu2 }
 0x13d   : > { %v353_v39 = vadd.f32 %v352_v37, %v315_v36 }
 0x13e   : > { %v349_v41 = vpop.f32.mrf.mxu1 }
 0x13f   : > { %v363_v43 = vmax.f32 %v359_v38, %v353_v39  ;;  %v350_v44 = vadd.f32 %v349_v41, %v311_v40 }
 0x141   : > { %368 = vst.msk [vmem:[#allocation2 + $0x10] sm:$0xff] %vm220_vm3, %v363_v43  ;;  %v362_v45 = vmax.f32 %v358_v42, %v350_v44 }
 0x142   : > { %v373_v47 = vld [vmem:[#allocation2] sm:$0xff] }
 0x143   : > { %367 = vst.msk [vmem:[#allocation2 + $0x8] sm:$0xff] %vm220_vm3, %v362_v45  ;;  %v377_v48 = vsel %vm220_vm3, %v373_v47, -inf }
 0x144   : > { %v354_v49 = vpop.f32.mrf.mxu2  ;;  %378 = vmax.xlane.f32.xlu2 %v377_v48 }
 0x145   : > { %v355_v51 = vadd.f32 %v354_v49, %v319_v46 }
 0x147   : > { %v364_v52 = vmax.f32 %v360_v50, %v355_v51 }
 0x148   : > { %v375_v53 = vld [vmem:[#allocation2 + $0x10] sm:$0xff] }
 0x149   : > { %369 = vst.msk [vmem:[#allocation2 + $0x18] sm:$0xff] %vm220_vm3, %v364_v52  ;;  %v383_v54 = vsel %vm220_vm3, %v375_v53, -inf }
 0x14a   : > { %384 = vmax.xlane.f32.xlu0 %v383_v54  ;;  %v374_v55 = vld [vmem:[#allocation2 + $0x8] sm:$0xff] }
 0x14b   : > { %v380_v56 = vsel %vm220_vm3, %v374_v55, -inf }
 0x14c   : > { %381 = vmax.xlane.f32.xlu1 %v380_v56 }
 0x150   : > { %v376_v57 = vld [vmem:[#allocation2 + $0x18] sm:$0xff] }
 0x151   : > { %v386_v58 = vsel %vm220_vm3, %v376_v57, -inf }
 0x152   : > { %387 = vmax.xlane.f32.xlu2 %v386_v58 }
 0x1b7   : > { %v379_v59 = vpop.xlane.xlu2 %378 }
 0x1b8   : > { %v389_v60 = vmul.f32 %v379_v59, %v785_v6 }
 0x1ba   : > { %v393_v0 = vsel %vm220_vm3, %v389_v60, 0.0 }
 0x1bd   : > { %v385_v61 = vpop.xlane.xlu0 %384 }
 0x1be   : > { %v391_v1 = vmul.f32 %v385_v61, %v783_v5 }
 0x1bf   : > { %v382_v62 = vpop.xlane.xlu1 %381 }
 0x1c0   : > { %v390_v63 = vmul.f32 %v382_v62, %v791_v8  ;;  %v396_v9 = vsel %vm220_vm3, %v391_v1, 0.0 }
 0x1c2   : > { %v394_v2 = vsel %vm220_vm3, %v390_v63, 0.0 }
 0x1c3   : > { %v395_v3 = vadd.f32 %v394_v2, %v393_v0 }
 0x1c5   : > { %v388_v4 = vpop.xlane.xlu2 %387  ;;  %v397_v11 = vadd.f32 %v396_v9, %v395_v3 }
 0x1c6   : > { %v392_v10 = vmul.f32 %v388_v4, %v789_v7 }
 0x1c8   : > { %v398_v12 = vsel %vm220_vm3, %v392_v10, 0.0 }
 0x1c9   : > { %v399_v6 = vadd.f32 %v398_v12, %v397_v11 }
 0x1cb   : > { %v400_v13 = vrot.slane %v399_v6, 4 }
 0x1cd   : > { %v401_v14 = vadd.f32 %v400_v13, %v399_v6 }
 0x1cf   : > { %v402_v8 = vrot.slane %v401_v14, 2 }
 0x1d1   : > { %v403_v15 = vadd.f32 %v402_v8, %v401_v14 }
 0x1d3   : > { %v404_v16 = vrot.slane %v403_v15, 1 }
 0x1d5   : > { %v405_v5 = vadd.f32 %v404_v16, %v403_v15 }
 0x1d7   : > { %v406_v18 = vadd.f32 %v405_v5, %v237_v17 }
 0x1d9   : > { %450 = vrot.lane.b32.xlu0 %v406_v18, %s715_s17  ;;  %v433_v19 = vsel %vm432_vm4, %v406_v18, -inf  ;;  %v415_v7 = vsel %vm414_vm5, %v406_v18, -inf  ;;  %v427_v39 = vmul.f32 %v570_v24, %v406_v18 }
 0x1da   : > { %434 = vmax.xlane.f32.xlu2 %v433_v19  ;;  %416 = vmax.xlane.f32.xlu1 %v415_v7 }
 0x1db   : > { %v428_v40 = vsel %vm414_vm5, %v427_v39, 0.0 }
 0x24b   : > { %v451_v25 = vpop.permute.xlu0 %450 }
 0x24c   : > { %v453_v26 = vmul.f32 %v570_v24, %v451_v25 }
 0x24d   : > { %v435_v27 = vpop.xlane.xlu2 %434  ;;  %v417_v28 = vpop.xlane.xlu1 %416 }
 0x24e   : > { %v436_v29 = vsub.f32 %v406_v18, %v435_v27  ;;  %v418_v30 = vsub.f32 %v406_v18, %v417_v28  ;;  %v454_v31 = vsel %vm414_vm5, %v453_v26, 0.0 }
 0x24f   : > { %455 = vadd.xlane.f32.xlu0 %v454_v31 }
 0x250   : > { %v437_v32 = vmul.f32 1.442695, %v436_v29  ;;  %v419_v33 = vmul.f32 1.442695, %v418_v30 }
 0x252   : > { %628 = vpow2.f32 %v437_v32 }
 0x253   : > { %630 = vpow2.f32 %v419_v33 }
 0x258   : > { %v629_v34 = vpop.eup %628 }
 0x259   : > { %v631_v35 = vpop.eup %630  ;;  %440 = vrot.lane.b32.xlu2 %v629_v34, %s715_s17 }
 0x25a   : > { %v421_v36 = vsel %vm414_vm5, %v631_v35, 0.0 }
 0x25b   : > { %422 = vadd.xlane.f32.xlu1 %v421_v36 }
 0x2b3   : > { %v441_v37 = vpop.permute.xlu2 %440 }
 0x2b4   : > { %v443_v38 = vsel %vm414_vm5, %v441_v37, 0.0 }
 0x2b5   : > { %444 = vadd.xlane.f32.xlu1 %v443_v38 }
 0x2bd   : > { %429 = vadd.xlane.f32.xlu1 %v428_v40 }
 0x2c2   : > { %v456_v50 = vpop.xlane.xlu0 %455 }
 0x2ce   : > { %v423_v41 = vpop.xlane.xlu1 %422 }
 0x2cf   : > { %632 = vlog2.f32 %v423_v41 }
 0x2d5   : > { %v633_v43 = vpop.eup %632 }
 0x2d6   : > { %v425_v44 = vmul.f32 0.6931472, %v633_v43 }
 0x2d8   : > { %v426_v49 = vadd.f32 %v425_v44, %v417_v28 }
 0x328   : > { %v445_v42 = vpop.xlane.xlu1 %444 }
 0x329   : > { %634 = vlog2.f32 %v445_v42 }
 0x32f   : > { %v635_v45 = vpop.eup %634 }
 0x330   : > { %v447_v46 = vmul.f32 0.6931472, %v635_v45  ;;  %v430_v47 = vpop.xlane.xlu1 %429 }
 0x331   : > { %v431_v52 = vsub.f32 %v426_v49, %v430_v47 }
 0x332   : > { %v448_v48 = vadd.f32 %v447_v46, %v435_v27 }
 0x334   : > { %v457_v51 = vsub.f32 %v448_v48, %v456_v50 }
 0x336   : > { %v458_v53 = vadd.f32 %v457_v51, %v431_v52 }
 0x338   : > { %v459_v54 = vsel %vm220_vm3, %v406_v18, %v458_v53 }
 0x339   : > { %v461_v55 = vsel %vm460_vm7, %v459_v54, 0.0 }
 0x33a   : > { %v462_v56 = vperm.slane %v461_v55, 0 }
 0x33c   : > { %463 = vst [vmem:[%s214_s24] sm:$0xff] %v462_v56 }
 0x33d PF: > { %s23_s21 = sadd.s32 1, %s706_s21   ;;  %s850_s19 = smov %s702_s20 }
 0x33e   : > { %p20_p8 = scmp.ge.s32.totalorder %s23_s21, 4   ;;  %s851_s20 = smov %s853_s22 }
 0x340   :  { %22 = sbr.rel (!%p20_p8) target bundleno = 8 (0x8), region = 75 }
 0x345   :  { %483 = vsyncpa [#allocation6], 1 }
 0x346   :  { %485 = vsyncpa [#allocation6 + $0x1], 1 }

</bundles_post_ra>
